<compile_context>
chip_gen: v5e
topology: v5e:2x2
jax: 0.10.0
libtpu: 0.0.40
codegen_flags: <defaults>
</compile_context>

<pallas_src>
import math
import functools

import jax
import jax.numpy as jnp
from jax import lax
from jax.experimental import pallas as pl
from jax.experimental.pallas import tpu as pltpu


def _mha_kernel(x_ref, wqkv_ref, bqkv_ref, wp_ref, bp_ref, out_ref, *,
                num_heads):
    """One batch element per grid step.

    x_ref   : (1, T, E)  activations (compute dtype = x.dtype)
    wqkv_ref: (E, 3E)    fused [Wq|Wk|Wv], pre-transposed to (in, out),
                         1/sqrt(D) already folded into the Q columns
    bqkv_ref: (1, 3E)    fused bias (Q part pre-scaled)
    wp_ref  : (E, E)     output projection, pre-transposed to (in, out)
    bp_ref  : (1, E)     output projection bias
    out_ref : (1, T, E)
    """
    x = x_ref[0]                           # (T, E), stays in input dtype
    T, E = x.shape
    D = E // num_heads
    dt = x.dtype

    # Fused QKV projection: one wide matmul (N = 3E lanes fills the MXU),
    # bias folded in, f32 accumulation.
    qkv = (jnp.dot(x, wqkv_ref[...], preferred_element_type=jnp.float32)
           + bqkv_ref[...].astype(jnp.float32))              # (T, 3E) f32

    # Causal mask (diagonal kept unmasked -> no 0/0 in the softmax).
    row = lax.broadcasted_iota(jnp.int32, (T, T), 0)
    col = lax.broadcasted_iota(jnp.int32, (T, T), 1)
    causal = col <= row

    # Per-head attention; accumulate the output projection per head into a
    # single (T, E) f32 accumulator.  Each head's intermediates die right
    # after its accumulation (no concat, bounded vreg pressure).
    acc = jnp.zeros((T, E), jnp.float32)
    for h in range(num_heads):
        lo = h * D
        q_h = qkv[:, lo:lo + D].astype(dt)                    # (T, D)
        k_h = qkv[:, E + lo:E + lo + D].astype(dt)            # (T, D)
        v_h = qkv[:, 2 * E + lo:2 * E + lo + D].astype(dt)    # (T, D)

        # Scores: contract the head dim directly (no explicit k.T relayout).
        # 1/sqrt(D) is already folded into q_h via the fused weight.
        s = lax.dot_general(q_h, k_h, (((1,), (1,)), ((), ())),
                            preferred_element_type=jnp.float32)   # (T, T)
        s = jnp.where(causal, s, -jnp.inf)

        # Softmax in f32; normalization via the EUP reciprocal (off the VPU).
        m = jnp.max(s, axis=-1, keepdims=True)
        p = jnp.exp(s - m)
        p = p * pl.reciprocal(jnp.sum(p, axis=-1, keepdims=True), approx=True)

        o_h = jnp.dot(p.astype(dt), v_h,
                      preferred_element_type=jnp.float32)         # (T, D)
        # Fold this head's slice of the output projection in now.
        acc = acc + jnp.dot(o_h.astype(dt), wp_ref[lo:lo + D, :],
                            preferred_element_type=jnp.float32)   # (T, E)

    out = acc + bp_ref[...].astype(jnp.float32)
    # TODO(synk): for small E (<128 lanes) a lane-dense (B, T*E) out_spec
    # would avoid masked partial stores; kept (B, T, E) for simplicity.
    out_ref[0] = out.astype(out_ref.dtype)


def multihead_attention(x, params, num_heads):
    """x: (B, T, E).  params use the PyTorch nn.Linear convention
    (W: (out_features, in_features), y = x @ W.T + b).

    Weights are pre-transposed, QKV-fused and scale-folded on the host so the
    kernel never transposes and runs a single wide QKV matmul.  Compute dtype
    follows x.dtype (pass bf16 for bf16 MXU matmuls); softmax and all matmul
    accumulations are f32 inside the kernel.
    """
    B, T, E = x.shape
    assert E % num_heads == 0, "invalid heads and embedding dimension"
    D = E // num_heads
    dt = x.dtype
    scale = 1.0 / math.sqrt(D)

    w_qkv = jnp.concatenate(
        [params["wq"].T * scale, params["wk"].T, params["wv"].T],
        axis=1).astype(dt)                                    # (E, 3E)
    b_qkv = jnp.concatenate(
        [params["bq"] * scale, params["bk"], params["bv"]]
    ).reshape(1, 3 * E).astype(dt)                            # (1, 3E)
    w_p = params["wp"].T.astype(dt)                           # (E, E)
    b_p = params["bp"].reshape(1, E).astype(dt)               # (1, E)

    return pl.pallas_call(
        functools.partial(_mha_kernel, num_heads=num_heads),
        out_shape=jax.ShapeDtypeStruct((B, T, E), dt),
        grid_spec=pltpu.PrefetchScalarGridSpec(
            num_scalar_prefetch=0,
            grid=(B,),
            in_specs=[
                pl.BlockSpec((1, T, E), lambda b: (b, 0, 0)),      # x
                pl.BlockSpec((E, 3 * E), lambda b: (0, 0)),        # fused Wqkv^T
                pl.BlockSpec((1, 3 * E), lambda b: (0, 0)),        # fused bias
                pl.BlockSpec((E, E), lambda b: (0, 0)),            # Wp^T
                pl.BlockSpec((1, E), lambda b: (0, 0)),            # bp
            ],
            out_specs=pl.BlockSpec((1, T, E), lambda b: (b, 0, 0)),
        ),
        compiler_params=pltpu.CompilerParams(
            dimension_semantics=("parallel",),
            # Explicit cap: covers v5e's 16 MiB scoped default and fits
            # comfortably inside v7x's 64 MiB physical VMEM.
            vmem_limit_bytes=32 * 1024 * 1024,
        ),
    )(x, w_qkv, b_qkv, w_p, b_p)


def _reference(x, params, num_heads):
    """Pure-JAX reference mirroring the PyTorch module (dropout = identity)."""
    B, T, E = x.shape
    D = E // num_heads

    def lin(x, w, b):
        return x @ w.T + b

    q = lin(x, params["wq"], params["bq"]).reshape(B, T, num_heads, D).transpose(0, 2, 1, 3)
    k = lin(x, params["wk"], params["bk"]).reshape(B, T, num_heads, D).transpose(0, 2, 1, 3)
    v = lin(x, params["wv"], params["bv"]).reshape(B, T, num_heads, D).transpose(0, 2, 1, 3)

    attn = jnp.einsum("bhqd,bhkd->bhqk", q, k) / math.sqrt(D)
    mask = jnp.tril(jnp.ones((T, T)))[None, None]
    attn = jnp.where(mask == 0, -jnp.inf, attn)
    attn = jax.nn.softmax(attn, axis=-1)
    y = jnp.einsum("bhqk,bhkd->bhqd", attn, v)
    y = y.transpose(0, 2, 1, 3).reshape(B, T, E)
    return lin(y, params["wp"], params["bp"])


if __name__ == "__main__":
    B, T, E, H = 2, 8, 32, 4   # batch, seq_len, embed_dim, num_heads

    key = jax.random.PRNGKey(0)
    keys = jax.random.split(key, 9)
    scale = 1.0 / math.sqrt(E)
    params = {
        "wq": jax.random.uniform(keys[0], (E, E), jnp.float32, -scale, scale),
        "bq": jax.random.uniform(keys[1], (E,), jnp.float32, -scale, scale),
        "wk": jax.random.uniform(keys[2], (E, E), jnp.float32, -scale, scale),
        "bk": jax.random.uniform(keys[3], (E,), jnp.float32, -scale, scale),
        "wv": jax.random.uniform(keys[4], (E, E), jnp.float32, -scale, scale),
        "bv": jax.random.uniform(keys[5], (E,), jnp.float32, -scale, scale),
        "wp": jax.random.uniform(keys[6], (E, E), jnp.float32, -scale, scale),
        "bp": jax.random.uniform(keys[7], (E,), jnp.float32, -scale, scale),
    }
    x = jax.random.normal(keys[8], (B, T, E), jnp.float32)

    out = multihead_attention(x, params, H)
    out = jax.block_until_ready(out)

    ref = _reference(x, params, H)
    assert out.shape == (B, T, E)
    # Slightly relaxed tolerance: the softmax normalization uses the
    # approximate EUP reciprocal (pl.reciprocal(..., approx=True)).
    assert jnp.allclose(out, ref, atol=2e-3, rtol=2e-3), "mismatch vs reference"

    print("KERNEL_OK")
</pallas_src>

<mosaic_0001>
module attributes {stable_mosaic.version = 11 : i64} {
  func.func @_mha_kernel(%arg0: i32, %arg1: memref<1x8x32xf32, #tpu.memory_space<vmem>>, %arg2: memref<32x96xf32, #tpu.memory_space<vmem>>, %arg3: memref<1x96xf32, #tpu.memory_space<vmem>>, %arg4: memref<32x32xf32, #tpu.memory_space<vmem>>, %arg5: memref<1x32xf32, #tpu.memory_space<vmem>>, %arg6: memref<1x8x32xf32, #tpu.memory_space<vmem>>) attributes {dimension_semantics = [#tpu.dimension_semantics<parallel>], iteration_bounds = array<i64: 2>, scalar_prefetch = 0 : i64, scratch_operands = 0 : i64, tpu.core_type = #tpu.core_type<tc>, window_params = [{transform_indices = @transform_0, window_bounds = array<i64: 1, 8, 32>}, {pipeline_mode = #tpu.pipeline_mode<synchronous>, transform_indices = @transform_1, window_bounds = array<i64: 32, 96>}, {pipeline_mode = #tpu.pipeline_mode<synchronous>, transform_indices = @transform_2, window_bounds = array<i64: 1, 96>}, {pipeline_mode = #tpu.pipeline_mode<synchronous>, transform_indices = @transform_3, window_bounds = array<i64: 32, 32>}, {pipeline_mode = #tpu.pipeline_mode<synchronous>, transform_indices = @transform_4, window_bounds = array<i64: 1, 32>}, {transform_indices = @transform_5, window_bounds = array<i64: 1, 8, 32>}]} {
    %c0 = arith.constant 0 : index
    %c0_0 = arith.constant 0 : index
    %c0_1 = arith.constant 0 : index
    %0 = vector.load %arg1[%c0, %c0_0, %c0_1] : memref<1x8x32xf32, #tpu.memory_space<vmem>>, vector<1x8x32xf32>
    %1 = vector.shape_cast %0 : vector<1x8x32xf32> to vector<8x32xf32>
    %c0_2 = arith.constant 0 : index
    %c0_3 = arith.constant 0 : index
    %2 = vector.load %arg2[%c0_2, %c0_3] : memref<32x96xf32, #tpu.memory_space<vmem>>, vector<32x96xf32>
    %cst = arith.constant dense<0.000000e+00> : vector<8x96xf32>
    %3 = tpu.matmul %1, %2, %cst {dimension_numbers = #tpu.dot_dimension_numbers<[1], [0], [0], [1], [0, 0, 1, 1], [], []>} : vector<8x32xf32>, vector<32x96xf32>, vector<8x96xf32> -> vector<8x96xf32>
    %c0_4 = arith.constant 0 : index
    %c0_5 = arith.constant 0 : index
    %4 = vector.load %arg3[%c0_4, %c0_5] : memref<1x96xf32, #tpu.memory_space<vmem>>, vector<1x96xf32>
    %5 = vector.broadcast %4 : vector<1x96xf32> to vector<8x96xf32>
    %6 = arith.addf %3, %5 : vector<8x96xf32>
    %7 = tpu.iota {dimensions = array<i32: 0>} : vector<8x8xi32>
    %8 = tpu.iota {dimensions = array<i32: 1>} : vector<8x8xi32>
    %9 = arith.cmpi sle, %8, %7 : vector<8x8xi32>
    %cst_6 = arith.constant 0.000000e+00 : f32
    %10 = vector.broadcast %cst_6 : f32 to vector<8x32xf32>
    %11 = vector.extract_strided_slice %6 {offsets = [0, 0], sizes = [8, 8], strides = [1, 1]} : vector<8x96xf32> to vector<8x8xf32>
    %12 = vector.extract_strided_slice %6 {offsets = [0, 32], sizes = [8, 8], strides = [1, 1]} : vector<8x96xf32> to vector<8x8xf32>
    %13 = vector.extract_strided_slice %6 {offsets = [0, 64], sizes = [8, 8], strides = [1, 1]} : vector<8x96xf32> to vector<8x8xf32>
    %cst_7 = arith.constant dense<0.000000e+00> : vector<8x8xf32>
    %14 = tpu.matmul %11, %12, %cst_7 {dimension_numbers = #tpu.dot_dimension_numbers<[1], [1], [0], [0], [0, 0, 1, 0], [], []>} : vector<8x8xf32>, vector<8x8xf32>, vector<8x8xf32> -> vector<8x8xf32>
    %cst_8 = arith.constant 0xFF800000 : f32
    %15 = vector.broadcast %cst_8 : f32 to vector<8x8xf32>
    %16 = arith.select %9, %14, %15 : vector<8x8xi1>, vector<8x8xf32>
    %cst_9 = arith.constant dense<0xFF800000> : vector<8xf32>
    %17 = vector.multi_reduction <maximumf>, %16, %cst_9 [1] : vector<8x8xf32> to vector<8xf32>
    %18 = vector.shape_cast %17 : vector<8xf32> to vector<8x1xf32>
    %19 = vector.broadcast %18 : vector<8x1xf32> to vector<8x8xf32>
    %20 = arith.subf %16, %19 : vector<8x8xf32>
    %21 = math.exp %20 : vector<8x8xf32>
    %cst_10 = arith.constant dense<0.000000e+00> : vector<8xf32>
    %22 = vector.multi_reduction <add>, %21, %cst_10 [1] : vector<8x8xf32> to vector<8xf32>
    %23 = vector.shape_cast %22 : vector<8xf32> to vector<8x1xf32>
    %24 = tpu.reciprocal %23 {approx = true} : vector<8x1xf32> -> vector<8x1xf32>
    %25 = vector.broadcast %24 : vector<8x1xf32> to vector<8x8xf32>
    %26 = arith.mulf %21, %25 : vector<8x8xf32>
    %cst_11 = arith.constant dense<0.000000e+00> : vector<8x8xf32>
    %27 = tpu.matmul %26, %13, %cst_11 {dimension_numbers = #tpu.dot_dimension_numbers<[1], [0], [0], [1], [0, 0, 1, 1], [], []>} : vector<8x8xf32>, vector<8x8xf32>, vector<8x8xf32> -> vector<8x8xf32>
    %c0_12 = arith.constant 0 : index
    %c0_13 = arith.constant 0 : index
    %28 = vector.load %arg4[%c0_12, %c0_13] : memref<32x32xf32, #tpu.memory_space<vmem>>, vector<8x32xf32>
    %cst_14 = arith.constant dense<0.000000e+00> : vector<8x32xf32>
    %29 = tpu.matmul %27, %28, %cst_14 {dimension_numbers = #tpu.dot_dimension_numbers<[1], [0], [0], [1], [0, 0, 1, 1], [], []>} : vector<8x8xf32>, vector<8x32xf32>, vector<8x32xf32> -> vector<8x32xf32>
    %30 = arith.addf %10, %29 : vector<8x32xf32>
    %31 = vector.extract_strided_slice %6 {offsets = [0, 8], sizes = [8, 8], strides = [1, 1]} : vector<8x96xf32> to vector<8x8xf32>
    %32 = vector.extract_strided_slice %6 {offsets = [0, 40], sizes = [8, 8], strides = [1, 1]} : vector<8x96xf32> to vector<8x8xf32>
    %33 = vector.extract_strided_slice %6 {offsets = [0, 72], sizes = [8, 8], strides = [1, 1]} : vector<8x96xf32> to vector<8x8xf32>
    %cst_15 = arith.constant dense<0.000000e+00> : vector<8x8xf32>
    %34 = tpu.matmul %31, %32, %cst_15 {dimension_numbers = #tpu.dot_dimension_numbers<[1], [1], [0], [0], [0, 0, 1, 0], [], []>} : vector<8x8xf32>, vector<8x8xf32>, vector<8x8xf32> -> vector<8x8xf32>
    %cst_16 = arith.constant 0xFF800000 : f32
    %35 = vector.broadcast %cst_16 : f32 to vector<8x8xf32>
    %36 = arith.select %9, %34, %35 : vector<8x8xi1>, vector<8x8xf32>
    %cst_17 = arith.constant dense<0xFF800000> : vector<8xf32>
    %37 = vector.multi_reduction <maximumf>, %36, %cst_17 [1] : vector<8x8xf32> to vector<8xf32>
    %38 = vector.shape_cast %37 : vector<8xf32> to vector<8x1xf32>
    %39 = vector.broadcast %38 : vector<8x1xf32> to vector<8x8xf32>
    %40 = arith.subf %36, %39 : vector<8x8xf32>
    %41 = math.exp %40 : vector<8x8xf32>
    %cst_18 = arith.constant dense<0.000000e+00> : vector<8xf32>
    %42 = vector.multi_reduction <add>, %41, %cst_18 [1] : vector<8x8xf32> to vector<8xf32>
    %43 = vector.shape_cast %42 : vector<8xf32> to vector<8x1xf32>
    %44 = tpu.reciprocal %43 {approx = true} : vector<8x1xf32> -> vector<8x1xf32>
    %45 = vector.broadcast %44 : vector<8x1xf32> to vector<8x8xf32>
    %46 = arith.mulf %41, %45 : vector<8x8xf32>
    %cst_19 = arith.constant dense<0.000000e+00> : vector<8x8xf32>
    %47 = tpu.matmul %46, %33, %cst_19 {dimension_numbers = #tpu.dot_dimension_numbers<[1], [0], [0], [1], [0, 0, 1, 1], [], []>} : vector<8x8xf32>, vector<8x8xf32>, vector<8x8xf32> -> vector<8x8xf32>
    %c8 = arith.constant 8 : index
    %c0_20 = arith.constant 0 : index
    %48 = vector.load %arg4[%c8, %c0_20] : memref<32x32xf32, #tpu.memory_space<vmem>>, vector<8x32xf32>
    %cst_21 = arith.constant dense<0.000000e+00> : vector<8x32xf32>
    %49 = tpu.matmul %47, %48, %cst_21 {dimension_numbers = #tpu.dot_dimension_numbers<[1], [0], [0], [1], [0, 0, 1, 1], [], []>} : vector<8x8xf32>, vector<8x32xf32>, vector<8x32xf32> -> vector<8x32xf32>
    %50 = arith.addf %30, %49 : vector<8x32xf32>
    %51 = vector.extract_strided_slice %6 {offsets = [0, 16], sizes = [8, 8], strides = [1, 1]} : vector<8x96xf32> to vector<8x8xf32>
    %52 = vector.extract_strided_slice %6 {offsets = [0, 48], sizes = [8, 8], strides = [1, 1]} : vector<8x96xf32> to vector<8x8xf32>
    %53 = vector.extract_strided_slice %6 {offsets = [0, 80], sizes = [8, 8], strides = [1, 1]} : vector<8x96xf32> to vector<8x8xf32>
    %cst_22 = arith.constant dense<0.000000e+00> : vector<8x8xf32>
    %54 = tpu.matmul %51, %52, %cst_22 {dimension_numbers = #tpu.dot_dimension_numbers<[1], [1], [0], [0], [0, 0, 1, 0], [], []>} : vector<8x8xf32>, vector<8x8xf32>, vector<8x8xf32> -> vector<8x8xf32>
    %cst_23 = arith.constant 0xFF800000 : f32
    %55 = vector.broadcast %cst_23 : f32 to vector<8x8xf32>
    %56 = arith.select %9, %54, %55 : vector<8x8xi1>, vector<8x8xf32>
    %cst_24 = arith.constant dense<0xFF800000> : vector<8xf32>
    %57 = vector.multi_reduction <maximumf>, %56, %cst_24 [1] : vector<8x8xf32> to vector<8xf32>
    %58 = vector.shape_cast %57 : vector<8xf32> to vector<8x1xf32>
    %59 = vector.broadcast %58 : vector<8x1xf32> to vector<8x8xf32>
    %60 = arith.subf %56, %59 : vector<8x8xf32>
    %61 = math.exp %60 : vector<8x8xf32>
    %cst_25 = arith.constant dense<0.000000e+00> : vector<8xf32>
    %62 = vector.multi_reduction <add>, %61, %cst_25 [1] : vector<8x8xf32> to vector<8xf32>
    %63 = vector.shape_cast %62 : vector<8xf32> to vector<8x1xf32>
    %64 = tpu.reciprocal %63 {approx = true} : vector<8x1xf32> -> vector<8x1xf32>
    %65 = vector.broadcast %64 : vector<8x1xf32> to vector<8x8xf32>
    %66 = arith.mulf %61, %65 : vector<8x8xf32>
    %cst_26 = arith.constant dense<0.000000e+00> : vector<8x8xf32>
    %67 = tpu.matmul %66, %53, %cst_26 {dimension_numbers = #tpu.dot_dimension_numbers<[1], [0], [0], [1], [0, 0, 1, 1], [], []>} : vector<8x8xf32>, vector<8x8xf32>, vector<8x8xf32> -> vector<8x8xf32>
    %c16 = arith.constant 16 : index
    %c0_27 = arith.constant 0 : index
    %68 = vector.load %arg4[%c16, %c0_27] : memref<32x32xf32, #tpu.memory_space<vmem>>, vector<8x32xf32>
    %cst_28 = arith.constant dense<0.000000e+00> : vector<8x32xf32>
    %69 = tpu.matmul %67, %68, %cst_28 {dimension_numbers = #tpu.dot_dimension_numbers<[1], [0], [0], [1], [0, 0, 1, 1], [], []>} : vector<8x8xf32>, vector<8x32xf32>, vector<8x32xf32> -> vector<8x32xf32>
    %70 = arith.addf %50, %69 : vector<8x32xf32>
    %71 = vector.extract_strided_slice %6 {offsets = [0, 24], sizes = [8, 8], strides = [1, 1]} : vector<8x96xf32> to vector<8x8xf32>
    %72 = vector.extract_strided_slice %6 {offsets = [0, 56], sizes = [8, 8], strides = [1, 1]} : vector<8x96xf32> to vector<8x8xf32>
    %73 = vector.extract_strided_slice %6 {offsets = [0, 88], sizes = [8, 8], strides = [1, 1]} : vector<8x96xf32> to vector<8x8xf32>
    %cst_29 = arith.constant dense<0.000000e+00> : vector<8x8xf32>
    %74 = tpu.matmul %71, %72, %cst_29 {dimension_numbers = #tpu.dot_dimension_numbers<[1], [1], [0], [0], [0, 0, 1, 0], [], []>} : vector<8x8xf32>, vector<8x8xf32>, vector<8x8xf32> -> vector<8x8xf32>
    %cst_30 = arith.constant 0xFF800000 : f32
    %75 = vector.broadcast %cst_30 : f32 to vector<8x8xf32>
    %76 = arith.select %9, %74, %75 : vector<8x8xi1>, vector<8x8xf32>
    %cst_31 = arith.constant dense<0xFF800000> : vector<8xf32>
    %77 = vector.multi_reduction <maximumf>, %76, %cst_31 [1] : vector<8x8xf32> to vector<8xf32>
    %78 = vector.shape_cast %77 : vector<8xf32> to vector<8x1xf32>
    %79 = vector.broadcast %78 : vector<8x1xf32> to vector<8x8xf32>
    %80 = arith.subf %76, %79 : vector<8x8xf32>
    %81 = math.exp %80 : vector<8x8xf32>
    %cst_32 = arith.constant dense<0.000000e+00> : vector<8xf32>
    %82 = vector.multi_reduction <add>, %81, %cst_32 [1] : vector<8x8xf32> to vector<8xf32>
    %83 = vector.shape_cast %82 : vector<8xf32> to vector<8x1xf32>
    %84 = tpu.reciprocal %83 {approx = true} : vector<8x1xf32> -> vector<8x1xf32>
    %85 = vector.broadcast %84 : vector<8x1xf32> to vector<8x8xf32>
    %86 = arith.mulf %81, %85 : vector<8x8xf32>
    %cst_33 = arith.constant dense<0.000000e+00> : vector<8x8xf32>
    %87 = tpu.matmul %86, %73, %cst_33 {dimension_numbers = #tpu.dot_dimension_numbers<[1], [0], [0], [1], [0, 0, 1, 1], [], []>} : vector<8x8xf32>, vector<8x8xf32>, vector<8x8xf32> -> vector<8x8xf32>
    %c24 = arith.constant 24 : index
    %c0_34 = arith.constant 0 : index
    %88 = vector.load %arg4[%c24, %c0_34] : memref<32x32xf32, #tpu.memory_space<vmem>>, vector<8x32xf32>
    %cst_35 = arith.constant dense<0.000000e+00> : vector<8x32xf32>
    %89 = tpu.matmul %87, %88, %cst_35 {dimension_numbers = #tpu.dot_dimension_numbers<[1], [0], [0], [1], [0, 0, 1, 1], [], []>} : vector<8x8xf32>, vector<8x32xf32>, vector<8x32xf32> -> vector<8x32xf32>
    %90 = arith.addf %70, %89 : vector<8x32xf32>
    %c0_36 = arith.constant 0 : index
    %c0_37 = arith.constant 0 : index
    %91 = vector.load %arg5[%c0_36, %c0_37] : memref<1x32xf32, #tpu.memory_space<vmem>>, vector<1x32xf32>
    %92 = vector.broadcast %91 : vector<1x32xf32> to vector<8x32xf32>
    %93 = arith.addf %90, %92 : vector<8x32xf32>
    %c0_38 = arith.constant 0 : index
    %c0_39 = arith.constant 0 : index
    %c0_40 = arith.constant 0 : index
    %94 = vector.load %arg6[%c0_38, %c0_39, %c0_40] : memref<1x8x32xf32, #tpu.memory_space<vmem>>, vector<1x8x32xf32>
    %95 = vector.shape_cast %94 : vector<1x8x32xf32> to vector<8x32xf32>
    %96 = vector.shape_cast %93 : vector<8x32xf32> to vector<1x8x32xf32>
    tpu.vector_store %arg6[%c0_38, %c0_39, %c0_40], %96 {strides = array<i32>} : memref<1x8x32xf32, #tpu.memory_space<vmem>>, vector<1x8x32xf32>,
    return
  }
  func.func @transform_0(%arg0: i32) -> (i32, i32, i32) {
    %c0_i32 = arith.constant 0 : i32
    %c0_i32_0 = arith.constant 0 : i32
    %c0_i32_1 = arith.constant 0 : i32
    return %arg0, %c0_i32, %c0_i32_0 : i32, i32, i32
  }
  func.func @transform_1(%arg0: i32) -> (i32, i32) {
    %c0_i32 = arith.constant 0 : i32
    %c0_i32_0 = arith.constant 0 : i32
    %c0_i32_1 = arith.constant 0 : i32
    return %c0_i32, %c0_i32_0 : i32, i32
  }
  func.func @transform_2(%arg0: i32) -> (i32, i32) {
    %c0_i32 = arith.constant 0 : i32
    %c0_i32_0 = arith.constant 0 : i32
    %c0_i32_1 = arith.constant 0 : i32
    return %c0_i32, %c0_i32_0 : i32, i32
  }
  func.func @transform_3(%arg0: i32) -> (i32, i32) {
    %c0_i32 = arith.constant 0 : i32
    %c0_i32_0 = arith.constant 0 : i32
    %c0_i32_1 = arith.constant 0 : i32
    return %c0_i32, %c0_i32_0 : i32, i32
  }
  func.func @transform_4(%arg0: i32) -> (i32, i32) {
    %c0_i32 = arith.constant 0 : i32
    %c0_i32_0 = arith.constant 0 : i32
    %c0_i32_1 = arith.constant 0 : i32
    return %c0_i32, %c0_i32_0 : i32, i32
  }
  func.func @transform_5(%arg0: i32) -> (i32, i32, i32) {
    %c0_i32 = arith.constant 0 : i32
    %c0_i32_0 = arith.constant 0 : i32
    %c0_i32_1 = arith.constant 0 : i32
    return %arg0, %c0_i32, %c0_i32_0 : i32, i32, i32
  }
}

</mosaic_0001>

<bundles_post_ra>
// kernel: tpu_custom_call.1
= control target key start
LH: loop header
LB: loop body
LE: loop exit
PB: predicated region body
PF: predicated region fallthrough
CT: control target
= control target key end

     0   :  { %10 = vsyncpa [#allocation3], 0  ;;  %s1326_s0 = inlined_call_operand.hbm [shape: f32[2,8,32], index: 0, kind: input, shape index: {}]   ;;  %s1327_s1 = inlined_call_operand.hbm [shape: f32[32,96], index: 1, kind: input, shape index: {}]   ;;  %s1328_s2 = inlined_call_operand.vmem [shape: f32[1,96], index: 2, kind: input, shape index: {}]   ;;  %s1329_s3 = inlined_call_operand.hbm [shape: f32[32,32], index: 3, kind: input, shape index: {}]   ;;  %s1330_s4 = inlined_call_operand.vmem [shape: f32[1,32], index: 4, kind: input, shape index: {}]   ;;  %s1331_s5 = inlined_call_operand.hbm [shape: f32[2,8,32], index: 5, kind: output, shape index: {}]  }
   0x1   :  { %12 = vsyncpa [#allocation3 + $0x1], 0 }
   0x2   :  { %13 = vsyncpa [#allocation6], 0 }
   0x3   :  { %14 = vsyncpa [#allocation4], 0 }
   0x4   :  { %16 = vsyncpa [#allocation4 + $0x1], 0  ;;  %s1124_s18 = smov 0   ;;  %s1126_s19 = smov 0  }
   0x5   :  { %s1128_s20 = smov 0   ;;  %s1130_s21 = smov 0  }
   0x6 LB: > { %s174_s24 = sshll.u32 %s1327_s1, 4  ;;  %s1148_s25 = sadd.s32 4294967295, %s1077_s21   ;;  %s1077_s21 = sphi %s1130_s21, %s1342_s21   ;;  %s1073_s20 = sphi %s1128_s20, %s1341_s20   ;;  %s1069_s19 = sphi %s1126_s19, %s1340_s19   ;;  %s1065_s18 = sphi %s1124_s18, %s1339_s18   ;;  %s175_s24 = int_to_ptr.hbm [resolvable:$true] %s174_s24 }
   0x7   : > { %p787_p0 = scmp.ge.s32.totalorder %s1077_s21, 1  ;;  %p43_p1 = scmp.eq.s32.totalorder %s1148_s25, 0 }
   0x8   : > { %p163_p2 = scmp.lt.s32.totalorder %s1077_s21, 3  ;;  %s1079_s27 = smov [#allocation5]  }
   0x9   : > { %s176_s28 = sshll.u32 %s1079_s27, 4  ;;  %s191_s6 = sshll.u32 %s1329_s3, 4  ;;  %s177_s28 = int_to_ptr.vmem [resolvable:$true] %s176_s28  ;;  %s192_s6 = int_to_ptr.hbm [resolvable:$true] %s191_s6 }
   0xa   : > { %p1153_p3 = pnand %p787_p0, %p163_p2  ;;  %s1080_s7 = smov [#allocation7]  }
   0xb   : > { %s193_s8 = sshll.u32 %s1080_s7, 4  ;;  %s1081_s9 = smov 128   ;;  %s194_s8 = int_to_ptr.vmem [resolvable:$true] %s193_s8 }
   0xc   : > { %p831_p4 = pneg %p1153_p3  ;;  %s1082_s10 = smov 8  }
   0xd   : > { %s786_s11 = sadd.s32 4294967294, %s1077_s21   ;;  %s1167_s12 = sadd.s32 1, %s1077_s21  }
   0xe   : > { %p832_p6 = pnand %p831_p4, %p43_p1  ;;  %s26_s13 = ssub.s32 %s1077_s21, %s1167_s12 }
   0xf   : > { %s29_s14 = sadd.s32 1, %s1073_s20  ;;  %p27_p7 = scmp.eq.s32.totalorder %s26_s13, 0 }
  0x10   : > { %834 = dma.hbm_to_vmem [thread:$0]  (!%p832_p6), %s175_s24, 512, %s177_s28, [#allocation6], %s1081_s9, %s1081_s9, %s1082_s10  }
  0x11   : > { %837 = dma.hbm_to_vmem [thread:$0]  (!%p832_p6), %s192_s6, 512, %s194_s8, [#allocation6], %s1081_s9, %s1081_s9, %s1082_s10  }
  0x12   : > { %p36_p8 = scmp.ne.s32.totalorder %s1073_s20, %s1069_s19  ;;  %p37_p9 = scmp.eq.s32.totalorder %s1077_s21, 0 }
  0x13   : > { %p42_p10 = scmp.ne.s32.totalorder %s1069_s19, %s1065_s18  ;;  %p150_p13 = scmp.eq.s32.totalorder %s1148_s25, 1 }
  0x14   : > { %s1178_s15 = scalar_select %p27_p7, %s1073_s20, %s29_s14  }
  0x15   : > { %p1180_p11 = por %p37_p9, %p36_p8  ;;  %p1186_p12 = por %p43_p1, %p42_p10 }
  0x16   : > { %p156_p0 = scmp.eq.s32.totalorder %s786_s11, 1  ;;  %p848_p2 = scmp.lt.s32.totalorder %s1077_s21, 2 }
  0x17   : > { %s210_s22 = sand.u32 1, %s1073_s20   ;;  %p1193_p4 = por %p150_p13, %p36_p8 }
  0x18   : > { %p1197_p6 = por %p156_p0, %p42_p10  ;;  %s791_s27 = sshll.u32 %s210_s22, 3 }
  0x19   : > { %s792_s28 = sshll.u32 %s1077_s21, 3  ;;  %s214_s7 = scalar_lea.vmem [#allocation2], %s791_s27 }
  0x1a   : > { %s218_s6 = scalar_lea.hbm %s1326_s0, %s792_s28  ;;  %s222_s8 = sshll.u32 %s214_s7, 4  ;;  %s223_s8 = int_to_ptr.vmem [resolvable:$true] %s222_s8 }
  0x1b   : > { %s220_s9 = sshll.u32 %s218_s6, 4  ;;  %p1207_p7 = pnand %p848_p2, %p1180_p11  ;;  %s221_s9 = int_to_ptr.hbm [resolvable:$true] %s220_s9 }
  0x1c   : > { %s211_s11 = scalar_lea.sflag [#allocation3], %s210_s22  ;;  %s977_s13 = sshra.s32 %s221_s9, 4  ;;  %s978_s13 = int_to_ptr.hbm [resolvable:$true] %s977_s13 }
  0x1d   : > { %s979_s14 = scalar_lea.hbm %s978_s13, 8  ;;  %p981_p9 = pneg %p1207_p7 }
  0x1e   : > { %p980_p8 = scmp.ne.s32.totalorder %s978_s13, %s979_s14  ;;  %s984_s29 = scalar_lea.hbm %s1326_s0, 16 }
  0x1f   : > { %p985_p11 = scmp.lt.s32.totalorder %s978_s13, %s1326_s0  ;;  %p986_p0 = scmp.lt.s32.totalorder %s984_s29, %s979_s14 }
  0x20   : > { %p982_p10 = pnand %p981_p9, %p980_p8 }
  0x21   : > { %p987_p2 = por %p986_p0, %p985_p11 }
  0x22   : > { %p983_p13 = pneg %p982_p10 }
  0x24   : > { %p988_p5 = pnand %p987_p2, %p983_p13 }
  0x26   : > { %991 = shalt.err (!%p988_p5)
}
  0x27   : > { %841 = dma.hbm_to_vmem [thread:$0]  (!%p1207_p7), %s221_s9, 128, %s223_s8, %s211_s11  }
  0x28   : > { %231 = sbr.rel (%p1153_p3) target bundleno = 1491 (0x5d3), region = 40  ;;  %s1224_s22 = sand.u32 (!%p1153_p3), 1, %s1069_s19  }
  0x29   : > { %s794_s6 = sshll.u32 (!%p1153_p3), %s1224_s22, 3  ;;  %s234_s7 = scalar_lea.sflag (!%p1153_p3), [#allocation3], %s1224_s22 }
  0x2a   : > { %s237_s13 = scalar_lea.vmem (!%p1153_p3), [#allocation2], %s794_s6 }
  0x2d   : > { %1052 = dma.done.wait (%p1186_p12), %s234_s7, 128  }
  0x2e   : > { %1054 = vsyncadd (%p1186_p12), %s234_s7, 4294967168 }
  0x2f   : > { %1056 = dma.done.wait (%p43_p1), [#allocation6], 1024  }
  0x30   : > { %1058 = vsyncadd (%p43_p1), [#allocation6], 4294966272  ;;  %v279_v0 = vld [vmem:[#allocation5 + $0x18] sm:$0xff]  ;;  %v278_v1 = vld [vmem:[#allocation5 + $0x10] sm:$0xff]  ;;  %vm284_vm0 = vcmask 261120   ;;  %s1083_s8 = smov 88   ;;  %v308_v15 = vlaneseq }
  0x31   : > { %300 = vmatpush.msra.mxu0 %v279_v0  ;;  %v277_v2 = vld [vmem:[#allocation5 + $0x8] sm:$0xff]  ;;  %v276_v3 = vld [vmem:[#allocation5] sm:$0xff]  ;;  %v275_v4 = vld [vmem:[%s237_s13] sm:$0xff]  ;;  %s1084_s9 = smov 96   ;;  %s1085_s10 = smov 120   ;;  %vm316_vm1 = vcmask 64512  }
  0x32   : > { %v899_v5 = vld [vmem:[%s1328_s2] ss:$0 sm:$0xff]  ;;  %s1086_s11 = smov 72   ;;  %s1087_s14 = smov 104   ;;  %v379_v8 = vld [vmem:[#allocation7] sm:$0xff]  ;;  %v309_v16 = vshrl.u32 %v308_v15, 7 }
  0x33   : > { %301 = vmatpush.msra.mxu0 %v278_v1  ;;  %s1088_s27 = smov 80   ;;  %v311_v17 = vand.u32 127, %v308_v15  ;;  %s1089_s28 = smov 64   ;;  %v900_v15 = vld [vmem:[%s1330_s4] ss:$0 sm:$0xff] }
  0x34   : > { %s1090_s29 = smov 112   ;;  %s1091_s30 = smov 48  }
  0x35   : > { %302 = vmatpush.msra.mxu0 %v277_v2  ;;  %vm312_vm2 = vcmp.le.s32.totalorder %v311_v17, %v309_v16  ;;  %s1092_s16 = smov 56   ;;  %s1093_s7 = smov 40  }
  0x36   : > { %s816_s13 = sshll.u32 %s1148_s25, 3  ;;  %s682_s25 = scalar_lea.sflag [#allocation4], %s1224_s22 }
  0x37   : > { %303 = vmatpush.msra.mxu0 %v276_v3 }
  0x38   : > { %798 = vmatmul.msk.f32.vlgmr.msra.gmra.mxu0 %vm284_vm0, %v275_v4 }
  0xb5   : > { %v305_v6 = vpop.f32.mrf.mxu0 }
  0xb6   : > { %v1242_v7 = vadd.f32 %v899_v5, %v305_v6  ;;  %v446_v5 = vld [vmem:[#allocation7 + $0x8] sm:$0xff]  ;;  %v559_v6 = vld [vmem:[#allocation7 + $0x10] sm:$0xff] }
  0xb8   : > { %382 = vrot.lane.b32.xlu2 %v1242_v7, %s1083_s8  ;;  %314 = vrot.lane.b32.xlu0 %v1242_v7, %s1084_s9  ;;  %s692_s8 = scalar_lea.hbm %s1331_s5, %s816_s13 }
  0xc0   : > { %380 = vrot.lane.b32.xlu2 %v1242_v7, %s1085_s10 }
  0xc8   : > { %586 = vrot.lane.b32.xlu2 %v1242_v7, %s1086_s11  ;;  %s274_s11 = scalar_lea.vmem [#allocation8], %s794_s6  ;;  %s1027_s6 = scalar_lea.hbm %s1331_s5, 16 }
  0xd0   : > { %584 = vrot.lane.b32.xlu2 %v1242_v7, %s1087_s14  ;;  %s694_s14 = sshll.u32 %s274_s11, 4  ;;  %s695_s14 = int_to_ptr.vmem [resolvable:$true] %s694_s14 }
  0xd8   : > { %495 = vrot.lane.b32.xlu2 %v1242_v7, %s1088_s27  ;;  %s696_s27 = sshll.u32 %s692_s8, 4  ;;  %s697_s27 = int_to_ptr.hbm [resolvable:$true] %s696_s27 }
 0x112   : > { %v383_v9 = vpop.permute.xlu2 %382 }
 0x113   : > { %802 = vmatpush.xpose.msk.msra.mxu3 %vm316_vm1, %v383_v9  ;;  %v650_v9 = vld [vmem:[#allocation7 + $0x18] sm:$0xff] }
 0x117   : > { %488 = vmatpush.msrb.mxu3 %v379_v8 }
 0x11a   : > { %v381_v10 = vpop.permute.xlu2 %380 }
 0x11b   : > { %803 = vmatmul.msk.f32.vlgmr.msra.gmra.mxu3 %vm316_vm1, %v381_v10 }
 0x122   : > { %v587_v11 = vpop.permute.xlu2 %586 }
 0x123   : > { %811 = vmatpush.xpose.msk.msra.mxu3 %vm316_vm1, %v587_v11 }
 0x12a   : > { %v585_v12 = vpop.permute.xlu2 %584  ;;  %v315_v13 = vpop.permute.xlu0 %314 }
 0x12b   : > { %799 = vmatpush.xpose.msk.msra.mxu1 %vm316_vm1, %v315_v13 }
 0x12e   : > { %800 = vmatmul.msk.f32.vlgmr.msra.gmra.mxu1 %vm316_vm1, %v1242_v7 }
 0x12f   : > { %465 = vmatpush.msrb.mxu1 %v446_v5 }
 0x131   : > { %578 = vmatpush.msra.mxu1 %v559_v6 }
 0x132   : > { %v496_v14 = vpop.permute.xlu2 %495 }
 0x133   : > { %807 = vmatpush.xpose.msk.msrb.mxu0 %vm316_vm1, %v496_v14 }
 0x19e   : > { %v405_v18 = vpop.f32.mrf.mxu3 }
 0x19f   : > { %v408_v19 = vsel %vm312_vm2, %v405_v18, -inf }
 0x1a0   : > { %v409_v20 = vsel %vm316_vm1, %v408_v19, -inf }
 0x1a1   : > { %410 = vmax.xlane.f32.xlu2 %v409_v20 }
 0x1ab   : > { %v338_v21 = vpop.f32.mrf.mxu1 }
 0x1ac   : > { %v341_v22 = vsel %vm312_vm2, %v338_v21, -inf }
 0x1ad   : > { %v342_v23 = vsel %vm316_vm1, %v341_v22, -inf }
 0x1ae   : > { %343 = vmax.xlane.f32.xlu0 %v342_v23 }
 0x214   : > { %v411_v38 = vpop.xlane.xlu2 %410 }
 0x215   : > { %v412_v40 = vsub.f32 %v408_v19, %v411_v38 }
 0x217   : > { %v413_v41 = vmul.f32 1.442695, %v412_v40 }
 0x221   : > { %v344_v24 = vpop.xlane.xlu0 %343 }
 0x222   : > { %v345_v25 = vsub.f32 %v341_v22, %v344_v24 }
 0x224   : > { %v346_v26 = vmul.f32 1.442695, %v345_v25 }
 0x226   : > { %901 = vpow2.f32 %v346_v26 }
 0x22c   : > { %v902_v27 = vpop.eup %901 }
 0x22d   : > { %v348_v28 = vsel %vm316_vm1, %v902_v27, 0.0 }
 0x22e   : > { %349 = vadd.xlane.f32.xlu1 %v348_v28 }
 0x247   : > { %353 = vrot.lane.b32.xlu1 %v1242_v7, %s1089_s28  ;;  %s1021_s28 = sshra.s32 %s697_s27, 4  ;;  %s1022_s28 = int_to_ptr.hbm [resolvable:$true] %s1021_s28 }
 0x248   : > { %p1028_p12 = scmp.lt.s32.totalorder %s1022_s28, %s1331_s5 }
 0x24f   : > { %493 = vrot.lane.b32.xlu1 %v1242_v7, %s1090_s29  ;;  %s1023_s29 = scalar_lea.hbm %s1022_s28, 8 }
 0x250   : > { %p1024_p1 = scmp.ne.s32.totalorder %s1022_s28, %s1023_s29  ;;  %p1029_p7 = scmp.lt.s32.totalorder %s1027_s6, %s1023_s29 }
 0x252   : > { %p1025_p3 = pnand %p1024_p1, %p1193_p4  ;;  %p1030_p8 = por %p1029_p7, %p1028_p12 }
 0x254   : > { %p1026_p5 = pneg %p1025_p3 }
 0x256   : > { %p1031_p9 = pnand %p1030_p8, %p1026_p5 }
 0x2a1   : > { %v350_v29 = vpop.xlane.xlu1 %349 }
 0x2a2   : > { %903 = vrcp.f32 %v350_v29 }
 0x2a3   : > { %905 = vpow2.f32 %v413_v41 }
 0x2a8   : > { %v904_v30 = vpop.eup %903 }
 0x2a9   : > { %v352_v32 = vmul.f32 %v904_v30, %v902_v27  ;;  %v906_v48 = vpop.eup %905 }
 0x2aa   : > { %v415_v49 = vsel %vm316_vm1, %v906_v48, 0.0 }
 0x2b9   : > { %v354_v31 = vpop.permute.xlu1 %353 }
 0x2ba   : > { %374 = vmatpush.msra.mxu2 %v354_v31 }
 0x2bb   : > { %801 = vmatmul.msk.f32.vlgmr.msra.gmra.mxu2 %vm316_vm1, %v352_v32 }
 0x2c1   : > { %v494_v33 = vpop.permute.xlu1 %493 }
 0x2c2   : > { %808 = vmatmul.msk.f32.vlgmr.msrb.gmra.mxu0 %vm316_vm1, %v494_v33 }
 0x33e   : > { %v376_v34 = vpop.f32.mrf.mxu2 }
 0x33f   : > { %806 = vmatmul.msk.f32.vlgmr.msrb.gmra.mxu3 %vm316_vm1, %v376_v34  ;;  %v518_v35 = vpop.f32.mrf.mxu0 }
 0x340   : > { %v521_v36 = vsel %vm312_vm2, %v518_v35, -inf }
 0x341   : > { %v522_v37 = vsel %vm316_vm1, %v521_v36, -inf }
 0x342   : > { %523 = vmax.xlane.f32.xlu1 %v522_v37 }
 0x347   : > { %812 = vmatmul.msk.f32.vlgmr.msra.gmra.mxu3 %vm316_vm1, %v585_v12 }
 0x35b   : > { %533 = vrot.lane.b32.xlu1 %v1242_v7, %s1091_s30 }
 0x3b5   : > { %v524_v42 = vpop.xlane.xlu1 %523 }
 0x3b6   : > { %v525_v44 = vsub.f32 %v521_v36, %v524_v42 }
 0x3b8   : > { %v526_v47 = vmul.f32 1.442695, %v525_v44 }
 0x3ba   : > { %907 = vpow2.f32 %v526_v47 }
 0x3c0   : > { %v908_v50 = vpop.eup %907 }
 0x3c1   : > { %v528_v51 = vsel %vm316_vm1, %v908_v50, 0.0 }
 0x3c2   : > { %v1271_v39 = vpop.f32.mrf.mxu3 }
 0x3ca   : > { %v609_v43 = vpop.f32.mrf.mxu3 }
 0x3cb   : > { %v612_v45 = vsel %vm312_vm2, %v609_v43, -inf }
 0x3cc   : > { %v613_v46 = vsel %vm316_vm1, %v612_v45, -inf }
 0x3cd   : > { %614 = vmax.xlane.f32.xlu0 %v613_v46  ;;  %v534_v62 = vpop.permute.xlu1 %533 }
 0x3d5   : > { %416 = vadd.xlane.f32.xlu0 %v415_v49 }
 0x3dd   : > { %529 = vadd.xlane.f32.xlu0 %v528_v51 }
 0x3f1   : > { %420 = vrot.lane.b32.xlu0 %v1242_v7, %s1092_s16 }
 0x440   : > { %v615_v52 = vpop.xlane.xlu0 %614 }
 0x441   : > { %v616_v53 = vsub.f32 %v612_v45, %v615_v52 }
 0x443   : > { %v617_v54 = vmul.f32 1.442695, %v616_v53 }
 0x445   : > { %909 = vpow2.f32 %v617_v54 }
 0x448   : > { %v417_v57 = vpop.xlane.xlu0 %416 }
 0x449   : > { %911 = vrcp.f32 %v417_v57 }
 0x44b   : > { %v910_v55 = vpop.eup %909 }
 0x44c   : > { %v619_v56 = vsel %vm316_vm1, %v910_v55, 0.0 }
 0x44d   : > { %620 = vadd.xlane.f32.xlu2 %v619_v56 }
 0x44f   : > { %v912_v59 = vpop.eup %911 }
 0x450   : > { %v530_v58 = vpop.xlane.xlu0 %529  ;;  %v419_v61 = vmul.f32 %v912_v59, %v906_v48 }
 0x451   : > { %913 = vrcp.f32 %v530_v58 }
 0x457   : > { %v914_v63 = vpop.eup %913 }
 0x458   : > { %v532_v0 = vmul.f32 %v914_v63, %v908_v50 }
 0x463   : > { %v421_v60 = vpop.permute.xlu0 %420 }
 0x464   : > { %441 = vmatpush.msrb.mxu2 %v421_v60 }
 0x465   : > { %624 = vrot.lane.b32.xlu2 %v1242_v7, %s1093_s7  ;;  %804 = vmatmul.msk.f32.vlgmr.msrb.gmra.mxu2 %vm316_vm1, %v419_v61 }
 0x466   : > { %554 = vmatpush.msra.mxu2 %v534_v62 }
 0x468   : > { %669 = vmatpush.msrb.mxu2 %v650_v9 }
 0x46d   : > { %809 = vmatmul.msk.f32.vlgmr.msra.gmra.mxu2 %vm316_vm1, %v532_v0 }
 0x4c0   : > { %v621_v1 = vpop.xlane.xlu2 %620 }
 0x4c1   : > { %915 = vrcp.f32 %v621_v1 }
 0x4c7   : > { %v916_v2 = vpop.eup %915 }
 0x4c8   : > { %v623_v3 = vmul.f32 %v916_v2, %v910_v55  ;;  %v625_v4 = vpop.permute.xlu2 %624 }
 0x4c9   : > { %645 = vmatpush.msra.mxu0 %v625_v4 }
 0x4ca   : > { %813 = vmatmul.msk.f32.vlgmr.msra.gmra.mxu0 %vm316_vm1, %v623_v3 }
 0x4e8   : > { %v443_v7 = vpop.f32.mrf.mxu2 }
 0x4e9   : > { %805 = vmatmul.msk.f32.vlgmr.msrb.gmra.mxu1 %vm316_vm1, %v443_v7 }
 0x4f0   : > { %v556_v8 = vpop.f32.mrf.mxu2 }
 0x4f1   : > { %810 = vmatmul.msk.f32.vlgmr.msra.gmra.mxu1 %vm316_vm1, %v556_v8 }
 0x547   : > { %v647_v10 = vpop.f32.mrf.mxu0 }
 0x548   : > { %814 = vmatmul.msk.f32.vlgmr.msrb.gmra.mxu2 %vm316_vm1, %v647_v10 }
 0x566   : > { %v467_v11 = vpop.f32.mrf.mxu1 }
 0x567   : > { %v491_v13 = vadd.f32 %v1271_v39, %v467_v11 }
 0x56e   : > { %v580_v12 = vpop.f32.mrf.mxu1 }
 0x56f   : > { %v583_v14 = vadd.f32 %v580_v12, %v491_v13 }
 0x5cb   : > { %v671_v16 = vpop.f32.mrf.mxu2 }
 0x5cc   : > { %v674_v17 = vadd.f32 %v671_v16, %v583_v14 }
 0x5ce   : > { %v679_v18 = vadd.f32 %v900_v15, %v674_v17 }
 0x5d0   : > { %680 = vst.msk [vmem:[%s274_s11] sm:$0xff] %vm284_vm0, %v679_v18 }
 0x5d1   : > { %1034 = shalt.err (!%p1031_p9)
}
 0x5d2   : > { %829 = dma.vmem_to_hbm [thread:$0]  (%p1193_p4), %s695_s14, 128, %s697_s27, %s682_s25  }
 0x5d3 PF: > { %s708_s22 = sand.u32 1, %s1065_s18   ;;  %p1338_p10 = scmp.ge.s32.totalorder %s1077_s21, 2 }
 0x5d4   : > { %s709_s26 = scalar_lea.sflag [#allocation4], %s708_s22 }
 0x5d5   : > { %p843_p13 = pnand %p1338_p10, %p1197_p6 }
 0x5d7   : > { %p844_p11 = pneg %p843_p13 }
 0x5d9   : > { %1060 = dma.done.wait (%p844_p11), %s709_s26, 128  }
 0x5da   : > { %1062 = vsyncadd (%p844_p11), %s709_s26, 4294967168  ;;  %p19_p0 = scmp.ge.s32.totalorder %s1167_s12, 4   ;;  %s1339_s18 = smov %s1069_s19 }
 0x5db   : > { %s1340_s19 = smov %s1073_s20  ;;  %s1341_s20 = smov %s1178_s15 }
 0x5dc   : > { %s1342_s21 = smov %s1167_s12  ;;  %21 = sbr.rel (!%p19_p0) target bundleno = 6 (0x6), region = 93 }
 0x5e1   :  { %715 = vsyncpa [#allocation3], 1 }
 0x5e2   :  { %717 = vsyncpa [#allocation3 + $0x1], 1 }
 0x5e3   :  { %718 = vsyncpa [#allocation6], 1 }
 0x5e4   :  { %719 = vsyncpa [#allocation4], 1 }
 0x5e5   :  { %721 = vsyncpa [#allocation4 + $0x1], 1 }

</bundles_post_ra>
